<compile_context>
chip_gen: v7x
topology: tpu7x:2x2x1
jax: 0.10.0
libtpu: 0.0.40
codegen_flags: <defaults>
</compile_context>

<pallas_src>
import math

import jax
import jax.numpy as jnp
from jax.experimental import pallas as pl
from jax.experimental.pallas import tpu as pltpu


def _round_up(x, m):
    return ((x + m - 1) // m) * m


def _make_mlp_kernel(num_layers):
    """Fused MLP forward: h = relu(h @ W_i + b_i) for i < L-1; last layer no ReLU."""

    def kernel(x_ref, w_ref, b_ref, out_ref):
        h = x_ref[...]                                   # f32 [batch_p, kp]
        for i in range(num_layers):                      # static unroll
            w = w_ref[i]                                 # bf16 [kp, kp]
            b = b_ref[i]                                 # f32  [1, kp]
            h = jnp.dot(
                h.astype(jnp.bfloat16), w,
                preferred_element_type=jnp.float32,
            ) + b
            if i < num_layers - 1:
                h = jnp.maximum(h, 0.0)                  # F.relu, f32
        out_ref[...] = h.astype(out_ref.dtype)

    return kernel


def prepare_qnetwork1_params(params, *, lane=128):
    """One-time padding / casting / stacking of the Linear layers.

    params: list of (W [in, out] f32, b [1, out] or [out] f32), in layer order
            (W is already the x @ W convention, i.e. PyTorch weight transposed).
    Returns a dict with the stacked bf16 weights, stacked f32 biases and static metadata.
    """
    num_layers = len(params)
    state_size = params[0][0].shape[0]
    action_size = params[-1][0].shape[1]
    dims = [state_size] + [w.shape[1] for w, _ in params]
    kp = _round_up(max(dims), lane)                      # uniform padded feature dim

    w_stack = jnp.zeros((num_layers, kp, kp), jnp.bfloat16)
    b_stack = jnp.zeros((num_layers, 1, kp), jnp.float32)
    for i, (w, b) in enumerate(params):
        w_stack = w_stack.at[i, : w.shape[0], : w.shape[1]].set(w.astype(jnp.bfloat16))
        b2 = jnp.reshape(b.astype(jnp.float32), (1, -1))
        b_stack = b_stack.at[i, :, : b2.shape[1]].set(b2)

    return {
        "w_stack": w_stack,
        "b_stack": b_stack,
        "num_layers": num_layers,
        "state_size": state_size,
        "action_size": action_size,
        "padded_dim": kp,
    }


def qnetwork1_forward(state, prepared, *, sublane=8):
    """state: [batch, state_size] f32 -> [batch, action_size] f32."""
    num_layers = prepared["num_layers"]
    kp = prepared["padded_dim"]
    state_size = prepared["state_size"]
    action_size = prepared["action_size"]
    w_stack = prepared["w_stack"]
    b_stack = prepared["b_stack"]

    batch = state.shape[0]
    batch_p = _round_up(batch, sublane)

    # Only the (tiny) input is padded per call; params were padded once at prepare time.
    x_p = (
        jnp.zeros((batch_p, kp), jnp.float32)
        .at[:batch, :state_size]
        .set(state.astype(jnp.float32))
    )

    # VMEM budget: clamp to physical capacity (v7x = 64 MiB per TensorCore).
    total_bytes = (
        x_p.size * x_p.dtype.itemsize
        + w_stack.size * w_stack.dtype.itemsize
        + b_stack.size * b_stack.dtype.itemsize
        + batch_p * kp * 4
    )
    try:
        vmem_cap = pltpu.get_tpu_info().vmem_capacity_bytes
    except Exception:
        vmem_cap = 64 << 20  # conservative: v7x per-TC VMEM
    vmem_limit = int(min(0.75 * vmem_cap, max(32 << 20, 2 * total_bytes + (4 << 20))))

    vmem_spec = pl.BlockSpec(memory_space=pltpu.MemorySpace.VMEM)
    out_padded = pl.pallas_call(
        _make_mlp_kernel(num_layers),
        out_shape=jax.ShapeDtypeStruct((batch_p, kp), jnp.float32),
        in_specs=[vmem_spec, vmem_spec, vmem_spec],
        out_specs=vmem_spec,
        compiler_params=pltpu.CompilerParams(vmem_limit_bytes=vmem_limit),
    )(x_p, w_stack, b_stack)

    return out_padded[:batch, :action_size]


def init_qnetwork1_params(key, state_size, action_size, hidden_size, hidden_layers):
    """Deterministic init mirroring nn.Linear's default uniform(-1/sqrt(fan_in), +)."""
    dims = [state_size] + [hidden_size] * (hidden_layers + 1) + [action_size]
    params = []
    for i in range(len(dims) - 1):
        fan_in, fan_out = dims[i], dims[i + 1]
        key, kw, kb = jax.random.split(key, 3)
        bound = 1.0 / math.sqrt(fan_in)
        w = jax.random.uniform(kw, (fan_in, fan_out), jnp.float32, -bound, bound)
        b = jax.random.uniform(kb, (1, fan_out), jnp.float32, -bound, bound)
        params.append((w, b))
    return params


def qnetwork1_reference_f32(state, params):
    """Pure-JAX f32 reference (matches PyTorch forward semantics)."""
    h = state
    for i, (w, b) in enumerate(params):
        h = h @ w + b
        if i < len(params) - 1:
            h = jnp.maximum(h, 0.0)
    return h


def qnetwork1_reference_bf16(state, params):
    """Pure-JAX reference mirroring the kernel's bf16-input / f32-accum matmuls."""
    h = state.astype(jnp.float32)
    for i, (w, b) in enumerate(params):
        h = jnp.dot(
            h.astype(jnp.bfloat16), w.astype(jnp.bfloat16),
            preferred_element_type=jnp.float32,
        ) + b
        if i < len(params) - 1:
            h = jnp.maximum(h, 0.0)
    return h


if __name__ == "__main__":
    # Shapes consistent with QNetwork1(state_size, action_size, seed, hidden_size,
    # hidden_layers): hidden_layers=2 -> 4 Linear layers total.
    batch = 8
    state_size = 16
    action_size = 4
    hidden_size = 32
    hidden_layers = 2

    key = jax.random.PRNGKey(0)
    key, kx = jax.random.split(key)
    state = jax.random.normal(kx, (batch, state_size), jnp.float32)

    params = init_qnetwork1_params(
        key, state_size, action_size, hidden_size, hidden_layers
    )

    # One-time parameter preparation (padding / cast / stacking) hoisted out of the
    # per-call path; forward is jitted with the prepared slabs captured as constants.
    prepared = prepare_qnetwork1_params(params)
    fwd = jax.jit(lambda s: qnetwork1_forward(s, prepared))

    out = fwd(state)
    out = jax.block_until_ready(out)
    assert out.shape == (batch, action_size), out.shape

    # Tight check vs. a reference mirroring the kernel's bf16/f32 mixed precision.
    ref_bf16 = qnetwork1_reference_bf16(state, params)
    assert jnp.allclose(out, ref_bf16, atol=1e-4, rtol=1e-4), "mismatch vs bf16 reference"

    # Loose sanity check vs. the full-f32 reference (bf16 MXU inputs).
    ref_f32 = qnetwork1_reference_f32(state, params)
    assert jnp.allclose(out, ref_f32, atol=5e-2, rtol=5e-2), "mismatch vs f32 reference"

    print("KERNEL_OK")
</pallas_src>

<mosaic_0001>
module attributes {stable_mosaic.version = 11 : i64} {
  func.func @kernel(%arg0: memref<8x128xf32, #tpu.memory_space<vmem>>, %arg1: memref<4x128x128xbf16, #tpu.memory_space<vmem>>, %arg2: memref<4x1x128xf32, #tpu.memory_space<vmem>>, %arg3: memref<8x128xf32, #tpu.memory_space<vmem>>) attributes {dimension_semantics = [], scalar_prefetch = 0 : i64, scratch_operands = 0 : i64, tpu.core_type = #tpu.core_type<tc>} {
    %c0 = arith.constant 0 : index
    %c0_0 = arith.constant 0 : index
    %0 = vector.load %arg0[%c0, %c0_0] : memref<8x128xf32, #tpu.memory_space<vmem>>, vector<8x128xf32>
    %c0_1 = arith.constant 0 : index
    %c0_2 = arith.constant 0 : index
    %c0_3 = arith.constant 0 : index
    %1 = vector.load %arg1[%c0_1, %c0_2, %c0_3] : memref<4x128x128xbf16, #tpu.memory_space<vmem>>, vector<1x128x128xbf16>
    %2 = vector.shape_cast %1 : vector<1x128x128xbf16> to vector<128x128xbf16>
    %c0_4 = arith.constant 0 : index
    %c0_5 = arith.constant 0 : index
    %c0_6 = arith.constant 0 : index
    %3 = vector.load %arg2[%c0_4, %c0_5, %c0_6] : memref<4x1x128xf32, #tpu.memory_space<vmem>>, vector<1x1x128xf32>
    %4 = vector.shape_cast %3 : vector<1x1x128xf32> to vector<1x128xf32>
    %5 = arith.truncf %0 : vector<8x128xf32> to vector<8x128xbf16>
    %cst = arith.constant dense<0.000000e+00> : vector<8x128xf32>
    %6 = tpu.matmul %5, %2, %cst {dimension_numbers = #tpu.dot_dimension_numbers<[1], [0], [0], [1], [0, 0, 1, 1], [], []>} : vector<8x128xbf16>, vector<128x128xbf16>, vector<8x128xf32> -> vector<8x128xf32>
    %7 = vector.broadcast %4 : vector<1x128xf32> to vector<8x128xf32>
    %8 = arith.addf %6, %7 : vector<8x128xf32>
    %cst_7 = arith.constant 0.000000e+00 : f32
    %9 = vector.broadcast %cst_7 : f32 to vector<8x128xf32>
    %10 = arith.maximumf %8, %9 : vector<8x128xf32>
    %c1 = arith.constant 1 : index
    %c0_8 = arith.constant 0 : index
    %c0_9 = arith.constant 0 : index
    %11 = vector.load %arg1[%c1, %c0_8, %c0_9] : memref<4x128x128xbf16, #tpu.memory_space<vmem>>, vector<1x128x128xbf16>
    %12 = vector.shape_cast %11 : vector<1x128x128xbf16> to vector<128x128xbf16>
    %c1_10 = arith.constant 1 : index
    %c0_11 = arith.constant 0 : index
    %c0_12 = arith.constant 0 : index
    %13 = vector.load %arg2[%c1_10, %c0_11, %c0_12] : memref<4x1x128xf32, #tpu.memory_space<vmem>>, vector<1x1x128xf32>
    %14 = vector.shape_cast %13 : vector<1x1x128xf32> to vector<1x128xf32>
    %15 = arith.truncf %10 : vector<8x128xf32> to vector<8x128xbf16>
    %cst_13 = arith.constant dense<0.000000e+00> : vector<8x128xf32>
    %16 = tpu.matmul %15, %12, %cst_13 {dimension_numbers = #tpu.dot_dimension_numbers<[1], [0], [0], [1], [0, 0, 1, 1], [], []>} : vector<8x128xbf16>, vector<128x128xbf16>, vector<8x128xf32> -> vector<8x128xf32>
    %17 = vector.broadcast %14 : vector<1x128xf32> to vector<8x128xf32>
    %18 = arith.addf %16, %17 : vector<8x128xf32>
    %cst_14 = arith.constant 0.000000e+00 : f32
    %19 = vector.broadcast %cst_14 : f32 to vector<8x128xf32>
    %20 = arith.maximumf %18, %19 : vector<8x128xf32>
    %c2 = arith.constant 2 : index
    %c0_15 = arith.constant 0 : index
    %c0_16 = arith.constant 0 : index
    %21 = vector.load %arg1[%c2, %c0_15, %c0_16] : memref<4x128x128xbf16, #tpu.memory_space<vmem>>, vector<1x128x128xbf16>
    %22 = vector.shape_cast %21 : vector<1x128x128xbf16> to vector<128x128xbf16>
    %c2_17 = arith.constant 2 : index
    %c0_18 = arith.constant 0 : index
    %c0_19 = arith.constant 0 : index
    %23 = vector.load %arg2[%c2_17, %c0_18, %c0_19] : memref<4x1x128xf32, #tpu.memory_space<vmem>>, vector<1x1x128xf32>
    %24 = vector.shape_cast %23 : vector<1x1x128xf32> to vector<1x128xf32>
    %25 = arith.truncf %20 : vector<8x128xf32> to vector<8x128xbf16>
    %cst_20 = arith.constant dense<0.000000e+00> : vector<8x128xf32>
    %26 = tpu.matmul %25, %22, %cst_20 {dimension_numbers = #tpu.dot_dimension_numbers<[1], [0], [0], [1], [0, 0, 1, 1], [], []>} : vector<8x128xbf16>, vector<128x128xbf16>, vector<8x128xf32> -> vector<8x128xf32>
    %27 = vector.broadcast %24 : vector<1x128xf32> to vector<8x128xf32>
    %28 = arith.addf %26, %27 : vector<8x128xf32>
    %cst_21 = arith.constant 0.000000e+00 : f32
    %29 = vector.broadcast %cst_21 : f32 to vector<8x128xf32>
    %30 = arith.maximumf %28, %29 : vector<8x128xf32>
    %c3 = arith.constant 3 : index
    %c0_22 = arith.constant 0 : index
    %c0_23 = arith.constant 0 : index
    %31 = vector.load %arg1[%c3, %c0_22, %c0_23] : memref<4x128x128xbf16, #tpu.memory_space<vmem>>, vector<1x128x128xbf16>
    %32 = vector.shape_cast %31 : vector<1x128x128xbf16> to vector<128x128xbf16>
    %c3_24 = arith.constant 3 : index
    %c0_25 = arith.constant 0 : index
    %c0_26 = arith.constant 0 : index
    %33 = vector.load %arg2[%c3_24, %c0_25, %c0_26] : memref<4x1x128xf32, #tpu.memory_space<vmem>>, vector<1x1x128xf32>
    %34 = vector.shape_cast %33 : vector<1x1x128xf32> to vector<1x128xf32>
    %35 = arith.truncf %30 : vector<8x128xf32> to vector<8x128xbf16>
    %cst_27 = arith.constant dense<0.000000e+00> : vector<8x128xf32>
    %36 = tpu.matmul %35, %32, %cst_27 {dimension_numbers = #tpu.dot_dimension_numbers<[1], [0], [0], [1], [0, 0, 1, 1], [], []>} : vector<8x128xbf16>, vector<128x128xbf16>, vector<8x128xf32> -> vector<8x128xf32>
    %37 = vector.broadcast %34 : vector<1x128xf32> to vector<8x128xf32>
    %38 = arith.addf %36, %37 : vector<8x128xf32>
    %c0_28 = arith.constant 0 : index
    %c0_29 = arith.constant 0 : index
    %39 = vector.load %arg3[%c0_28, %c0_29] : memref<8x128xf32, #tpu.memory_space<vmem>>, vector<8x128xf32>
    tpu.vector_store %arg3[%c0_28, %c0_29], %38 {strides = array<i32>} : memref<8x128xf32, #tpu.memory_space<vmem>>, vector<8x128xf32>,
    return
  }
}

</mosaic_0001>

<bundles_post_ra>
// kernel: _lambda_.1
= control target key start
LH: loop header
LB: loop body
LE: loop exit
PB: predicated region body
PF: predicated region fallthrough
CT: control target
= control target key end

     0   :  { %8 = vsyncpa [#allocation3], 0  ;;  %s709_s12 = smov [#allocation2]   ;;  %s804_s0 = inlined_call_operand.vmem [shape: f32[8,128], index: 0, kind: input, shape index: {}]   ;;  %s805_s1 = inlined_call_operand.hbm [shape: bf16[4,128,128], index: 1, kind: input, shape index: {}]   ;;  %s806_s2 = inlined_call_operand.vmem [shape: f32[4,1,128], index: 2, kind: input, shape index: {}]   ;;  %s807_s3 = inlined_call_operand.vmem [shape: f32[8,128], index: 3, kind: output, shape index: {}]  }
   0x1   :  { %s16_s13 = sshll.u32 %s709_s12, 4  ;;  %s685_s16 = scalar_lea.hbm %s805_s1, 4096  ;;  %s17_s13 = int_to_ptr.vmem [resolvable:$true] %s16_s13 }
   0x2   :  { %p686_p0 = scmp.ne.s32.totalorder %s805_s1, %s685_s16  ;;  %p689_p1 = scmp.lt.u32.totalorder %s685_s16, %s805_s1 }
   0x4   :  { %p691_p2 = pnand %p689_p1, %p686_p0 }
   0x6   :  { %694 = shalt.err (!%p691_p2)
}
   0x7   :  { %s695_s21 = scalar_lea.vmem %s17_s13, 4096  ;;  %p700_p4 = scmp.lt.s32.totalorder %s17_s13, %s17_s13 }
   0x8   :  { %p696_p3 = scmp.ne.s32.totalorder %s17_s13, %s695_s21  ;;  %p701_p5 = scmp.lt.s32.totalorder %s695_s21, %s695_s21 }
   0xa   :  { %p702_p6 = por %p701_p5, %p700_p4 }
   0xc   :  { %p703_p7 = pnand %p702_p6, %p696_p3 }
   0xe   :  { %706 = shalt.err (!%p703_p7)
}
   0xf   :  { %s710_s22 = smov 64   ;;  %s711_s23 = smov 4  }
  0x10   :  { %22 = dma.hbm_to_vmem [thread:$0]  %s805_s1, 4096, %s17_s13, [#allocation3], %s710_s22, %s710_s22, %s711_s23  }
  0x11   :  { %707 = dma.done.wait [#allocation3], 4096  }
  0x12   :  { %708 = vsyncadd [#allocation3], 4294963200  ;;  %v712_v0 = vmov 0.0   ;;  %vm713_vm0 = vmmov 0   ;;  %v653_v1 = vld [vmem:[#allocation2] sm:$0xff]   ;;  %v654_v2 = vld [vmem:[#allocation2 + $0x8] sm:$0xff]  }
  0x13   :  { %568 = vmatprep.subr.bf16.mxu0 %v712_v0  ;;  %584 = vmatprep.mubr.msk.bf16.mxu0 %vm713_vm0, %v712_v0  ;;  %v655_v3 = vld [vmem:[#allocation2 + $0x10] sm:$0xff]   ;;  %v661_v4 = vld [vmem:[#allocation2 + $0x40] sm:$0xff]   ;;  %v656_v5 = vld [vmem:[#allocation2 + $0x18] sm:$0xff]  }
  0x14   :  { %588 = vmatprep.subr.bf16.mxu1 %v712_v0  ;;  %604 = vmatprep.mubr.msk.bf16.mxu1 %vm713_vm0, %v712_v0  ;;  %v662_v6 = vld [vmem:[#allocation2 + $0x48] sm:$0xff]   ;;  %v657_v7 = vld [vmem:[#allocation2 + $0x20] sm:$0xff]   ;;  %v663_v8 = vld [vmem:[#allocation2 + $0x50] sm:$0xff]  }
  0x15   :  { %569 = vmatpush3.bf16.msra.mxu0 %v653_v1  ;;  %589 = vmatpush3.bf16.msra.mxu1 %v661_v4  ;;  %v658_v9 = vld [vmem:[#allocation2 + $0x28] sm:$0xff]   ;;  %v664_v10 = vld [vmem:[#allocation2 + $0x58] sm:$0xff]   ;;  %v659_v11 = vld [vmem:[#allocation2 + $0x30] sm:$0xff]  }
  0x16   :  { %570 = vmatprep.subr.bf16.mxu0 %v712_v0  ;;  %590 = vmatprep.subr.bf16.mxu1 %v712_v0  ;;  %v665_v12 = vld [vmem:[#allocation2 + $0x60] sm:$0xff]   ;;  %v660_v13 = vld [vmem:[#allocation2 + $0x38] sm:$0xff]   ;;  %v666_v15 = vld [vmem:[#allocation2 + $0x68] sm:$0xff]  }
  0x17   :  { %v29_v14 = vld [vmem:[%s804_s0] sm:$0xff]  ;;  %v667_v17 = vld [vmem:[#allocation2 + $0x70] sm:$0xff]   ;;  %v668_v18 = vld [vmem:[#allocation2 + $0x78] sm:$0xff]  }
  0x18   :  { %v47_v16 = vpack.c.bf16 %v29_v14, %v29_v14  ;;  %v669_v19 = vld [vmem:[#allocation2 + $0x80] sm:$0xff]   ;;  %v670_v20 = vld [vmem:[#allocation2 + $0x88] sm:$0xff]   ;;  %v671_v21 = vld [vmem:[#allocation2 + $0x90] sm:$0xff]  }
  0x19   :  { %571 = vmatpush3.bf16.msra.mxu0 %v654_v2  ;;  %591 = vmatpush3.bf16.msra.mxu1 %v662_v6  ;;  %v672_v22 = vld [vmem:[#allocation2 + $0x98] sm:$0xff]   ;;  %v673_v23 = vld [vmem:[#allocation2 + $0xa0] sm:$0xff]   ;;  %v674_v24 = vld [vmem:[#allocation2 + $0xa8] sm:$0xff]  }
  0x1a   :  { %572 = vmatprep.subr.bf16.mxu0 %v712_v0  ;;  %592 = vmatprep.subr.bf16.mxu1 %v712_v0  ;;  %v493_v25 = vld [vmem:[%s806_s2] ss:$0 sm:$0xff]  ;;  %v675_v33 = vld [vmem:[#allocation2 + $0xb0] sm:$0xff]   ;;  %v676_v34 = vld [vmem:[#allocation2 + $0xb8] sm:$0xff]  }
  0x1b   :  { %v677_v35 = vld [vmem:[#allocation2 + $0xc0] sm:$0xff]   ;;  %v678_v36 = vld [vmem:[#allocation2 + $0xc8] sm:$0xff]   ;;  %v679_v37 = vld [vmem:[#allocation2 + $0xd0] sm:$0xff]  }
  0x1c   :  { %v680_v38 = vld [vmem:[#allocation2 + $0xd8] sm:$0xff]   ;;  %v681_v39 = vld [vmem:[#allocation2 + $0xe0] sm:$0xff]   ;;  %v682_v40 = vld [vmem:[#allocation2 + $0xe8] sm:$0xff]  }
  0x1d   :  { %573 = vmatpush3.bf16.msra.mxu0 %v655_v3  ;;  %593 = vmatpush3.bf16.msra.mxu1 %v663_v8  ;;  %v503_v41 = vld [vmem:[%s806_s2 + $0x1] ss:$0 sm:$0xff]  ;;  %v683_v49 = vld [vmem:[#allocation2 + $0xf0] sm:$0xff]   ;;  %v684_v50 = vld [vmem:[#allocation2 + $0xf8] sm:$0xff]  }
  0x1e   :  { %574 = vmatprep.subr.bf16.mxu0 %v712_v0  ;;  %594 = vmatprep.subr.bf16.mxu1 %v712_v0  ;;  %v513_v51 = vld [vmem:[%s806_s2 + $0x2] ss:$0 sm:$0xff]  ;;  %v523_v59 = vld [vmem:[%s806_s2 + $0x3] ss:$0 sm:$0xff] }
  0x21   :  { %575 = vmatpush3.bf16.msra.mxu0 %v656_v5  ;;  %595 = vmatpush3.bf16.msra.mxu1 %v664_v10 }
  0x22   :  { %576 = vmatprep.subr.bf16.mxu0 %v712_v0  ;;  %596 = vmatprep.subr.bf16.mxu1 %v712_v0 }
  0x25   :  { %577 = vmatpush3.bf16.msra.mxu0 %v657_v7  ;;  %597 = vmatpush3.bf16.msra.mxu1 %v665_v12 }
  0x26   :  { %578 = vmatprep.subr.bf16.mxu0 %v712_v0  ;;  %598 = vmatprep.subr.bf16.mxu1 %v712_v0 }
  0x29   :  { %579 = vmatpush3.bf16.msra.mxu0 %v658_v9  ;;  %599 = vmatpush3.bf16.msra.mxu1 %v666_v15 }
  0x2a   :  { %580 = vmatprep.subr.bf16.mxu0 %v712_v0  ;;  %600 = vmatprep.subr.bf16.mxu1 %v712_v0 }
  0x2d   :  { %581 = vmatpush3.bf16.msra.mxu0 %v659_v11  ;;  %601 = vmatpush3.bf16.msra.mxu1 %v667_v17 }
  0x2e   :  { %582 = vmatprep.subr.bf16.mxu0 %v712_v0  ;;  %602 = vmatprep.subr.bf16.mxu1 %v712_v0 }
  0x31   :  { %583 = vmatpush3.bf16.msra.mxu0 %v660_v13  ;;  %603 = vmatpush3.bf16.msra.mxu1 %v668_v18 }
  0x32   :  { %608 = vmatprep.subr.bf16.mxu0 %v712_v0  ;;  %628 = vmatprep.subr.bf16.mxu1 %v712_v0 }
  0x34   :  { %585 = vmatmul.mubr.bf16.vlgmr.msra.gmra.mrb[0].mxu0 %v47_v16 }
  0x35   :  { %624 = vmatprep.mubr.msk.bf16.mxu0 %vm713_vm0, %v712_v0  ;;  %609 = vmatpush3.bf16.msra.mxu0 %v669_v19 }
  0x36   :  { %610 = vmatprep.subr.bf16.mxu0 %v712_v0 }
  0x39   :  { %611 = vmatpush3.bf16.msra.mxu0 %v670_v20 }
  0x3a   :  { %612 = vmatprep.subr.bf16.mxu0 %v712_v0 }
  0x3d   :  { %613 = vmatpush3.bf16.msra.mxu0 %v671_v21 }
  0x3e   :  { %614 = vmatprep.subr.bf16.mxu0 %v712_v0 }
  0x41   :  { %615 = vmatpush3.bf16.msra.mxu0 %v672_v22 }
  0x42   :  { %616 = vmatprep.subr.bf16.mxu0 %v712_v0 }
  0x45   :  { %617 = vmatpush3.bf16.msra.mxu0 %v673_v23 }
  0x46   :  { %618 = vmatprep.subr.bf16.mxu0 %v712_v0 }
  0x49   :  { %619 = vmatpush3.bf16.msra.mxu0 %v674_v24 }
  0x4a   :  { %620 = vmatprep.subr.bf16.mxu0 %v712_v0 }
  0x4d   :  { %621 = vmatpush3.bf16.msra.mxu0 %v675_v33 }
  0x4e   :  { %622 = vmatprep.subr.bf16.mxu0 %v712_v0 }
  0x51   :  { %623 = vmatpush3.bf16.msra.mxu0 %v676_v34 }
 0x107   :  { %v136_v26 = vpop.f32.mrb[0].mxu0 }
 0x108   :  { %v137_v27 = vadd.f32 %v493_v25, %v136_v26  ;;  %v586_v28 = vpop.f32.mrb[1].mxu0 }
 0x109   :  { %v139_v29 = vpop.f32.mrb[2].mxu0 }
 0x10a   :  { %v142_v30 = vmax.f32 %v137_v27, 0.0  ;;  %v587_v31 = vpop.f32.mrb[3].mxu0 }
 0x10c   :  { %v162_v32 = vpack.c.bf16 %v142_v30, %v142_v30 }
 0x10e   :  { %605 = vmatmul.mubr.bf16.vlgmr.msra.gmra.mrb[0].mxu1 %v162_v32 }
 0x10f   :  { %644 = vmatprep.mubr.msk.bf16.mxu1 %vm713_vm0, %v712_v0  ;;  %629 = vmatpush3.bf16.msra.mxu1 %v677_v35 }
 0x110   :  { %630 = vmatprep.subr.bf16.mxu1 %v712_v0 }
 0x113   :  { %631 = vmatpush3.bf16.msra.mxu1 %v678_v36 }
 0x114   :  { %632 = vmatprep.subr.bf16.mxu1 %v712_v0 }
 0x117   :  { %633 = vmatpush3.bf16.msra.mxu1 %v679_v37 }
 0x118   :  { %634 = vmatprep.subr.bf16.mxu1 %v712_v0 }
 0x11b   :  { %635 = vmatpush3.bf16.msra.mxu1 %v680_v38 }
 0x11c   :  { %636 = vmatprep.subr.bf16.mxu1 %v712_v0 }
 0x11f   :  { %637 = vmatpush3.bf16.msra.mxu1 %v681_v39 }
 0x120   :  { %638 = vmatprep.subr.bf16.mxu1 %v712_v0 }
 0x123   :  { %639 = vmatpush3.bf16.msra.mxu1 %v682_v40 }
 0x124   :  { %640 = vmatprep.subr.bf16.mxu1 %v712_v0 }
 0x127   :  { %641 = vmatpush3.bf16.msra.mxu1 %v683_v49 }
 0x128   :  { %642 = vmatprep.subr.bf16.mxu1 %v712_v0 }
 0x12b   :  { %643 = vmatpush3.bf16.msra.mxu1 %v684_v50 }
 0x1e1   :  { %v251_v42 = vpop.f32.mrb[0].mxu1 }
 0x1e2   :  { %v252_v43 = vadd.f32 %v503_v41, %v251_v42  ;;  %v606_v44 = vpop.f32.mrb[1].mxu1 }
 0x1e3   :  { %v254_v45 = vpop.f32.mrb[2].mxu1 }
 0x1e4   :  { %v257_v46 = vmax.f32 %v252_v43, 0.0  ;;  %v607_v47 = vpop.f32.mrb[3].mxu1 }
 0x1e6   :  { %v277_v48 = vpack.c.bf16 %v257_v46, %v257_v46 }
 0x1e8   :  { %625 = vmatmul.mubr.bf16.vlgmr.msra.gmra.mrb[4].mxu0 %v277_v48 }
 0x2bb   :  { %v366_v52 = vpop.f32.mrb[4].mxu0 }
 0x2bc   :  { %v367_v53 = vadd.f32 %v513_v51, %v366_v52  ;;  %v626_v54 = vpop.f32.mrb[5].mxu0 }
 0x2bd   :  { %v369_v55 = vpop.f32.mrb[6].mxu0 }
 0x2be   :  { %v372_v56 = vmax.f32 %v367_v53, 0.0  ;;  %v627_v57 = vpop.f32.mrb[7].mxu0 }
 0x2c0   :  { %v392_v58 = vpack.c.bf16 %v372_v56, %v372_v56 }
 0x2c2   :  { %645 = vmatmul.mubr.bf16.vlgmr.msra.gmra.mrb[4].mxu1 %v392_v58 }
 0x395   :  { %v481_v60 = vpop.f32.mrb[4].mxu1 }
 0x396   :  { %v482_v61 = vadd.f32 %v523_v59, %v481_v60  ;;  %v646_v62 = vpop.f32.mrb[5].mxu1 }
 0x397   :  { %v484_v63 = vpop.f32.mrb[6].mxu1 }
 0x398   :  { %487 = vst [vmem:[%s807_s3] sm:$0xff] %v482_v61  ;;  %v647_v0 = vpop.f32.mrb[7].mxu1 }
 0x399   :  { %492 = vsyncpa [#allocation3], 1 }

</bundles_post_ra>
